<compile_context>
chip_gen: v6e
topology: v6e:2x2x1
jax: 0.10.0
libtpu: 0.0.40
codegen_flags: <defaults>
</compile_context>

<pallas_src>
import functools
import math

import jax
import jax.numpy as jnp
from jax.experimental import pallas as pl
from jax.experimental.pallas import tpu as pltpu


# ---------------------------------------------------------------------------
# Kernel
# ---------------------------------------------------------------------------

def _tree_reduce(vals, op):
    """Pairwise (log-depth) reduction of a list of arrays."""
    vals = list(vals)
    while len(vals) > 1:
        nxt = [op(vals[i], vals[i + 1]) for i in range(0, len(vals) - 1, 2)]
        if len(vals) % 2:
            nxt.append(vals[-1])
        vals = nxt
    return vals[0]


def _maxmin_kernel(x_ref, o_ref, *, num_units, group, channels, outer_tile):
    # x_ref : (outer_tile * channels, TL)        rows = [outer row t][channel c]
    # o_ref : (outer_tile * 2*num_units, TL)     rows = [outer row t][max..., min...]
    out_c = 2 * num_units
    for t in range(outer_tile):
        for u in range(num_units):
            base = t * channels + u * group
            rows = [x_ref[base + i:base + i + 1, :] for i in range(group)]
            mx = _tree_reduce(rows, jnp.maximum)     # VPU elementwise, full-lane rows
            mn = _tree_reduce(rows, jnp.minimum)
            o_row = t * out_c + u
            o_ref[o_row:o_row + 1, :] = mx
            o_ref[o_row + num_units:o_row + num_units + 1, :] = mn


# ---------------------------------------------------------------------------
# Tile-size selection
# ---------------------------------------------------------------------------

_VMEM_BUDGET_BYTES = 24 * 1024 * 1024   # total double-buffered (in + out) footprint, v7x-safe
_MAX_BLOCK_ROWS = 128                   # sublane rows per block (bounds unroll + VMEM)
_MAX_BLOCK_LANES = 2048                 # lane-tile cap


def _choose_lane_tile(inner):
    """Largest lane tile that is a multiple of 128 (or the full dim as fallback)."""
    if inner % 128 != 0:
        # Full (possibly narrow / misaligned) lane dim: always legal, may use masked
        # stores. TODO(synk): re-lay-out axis=-1 / narrow-inner inputs onto lanes so
        # stores stay full-width for those shapes too.
        return inner
    if inner <= _MAX_BLOCK_LANES:
        return inner
    d = (_MAX_BLOCK_LANES // 128) * 128
    while d > 128:
        if inner % d == 0:
            return d
        d -= 128
    return 128


def _choose_outer_tile(outer, base_to, to_max, lane_steps):
    """Pick how many leading rows to fold into each block."""
    best, best_key = 1, None
    for d in range(1, min(outer, to_max) + 1):
        if outer % d:
            continue
        key = (
            (outer // d) * lane_steps >= 2,   # keep >= 2 grid steps (v7x megacore)
            d % base_to == 0,                 # dense sublanes (no padding rows)
            d,                                # bigger DMAs
        )
        if best_key is None or key > best_key:
            best, best_key = d, key
    return best


# ---------------------------------------------------------------------------
# Forward pass
# ---------------------------------------------------------------------------

def maxmin_forward(x, num_units, axis=1):
    """MaxMin forward pass; matches the PyTorch module's semantics."""
    shape = x.shape
    ax = axis % x.ndim
    C = shape[ax]
    if C % num_units:
        raise ValueError(
            "number of features({}) is not a multiple of num_units({})".format(C, num_units))
    group = C // num_units
    out_c = 2 * num_units

    outer = 1
    for d in shape[:ax]:
        outer *= d
    inner = 1
    for d in shape[ax + 1:]:
        inner *= d

    itemsize = jnp.dtype(x.dtype).itemsize
    sub_pack = 8 * max(1, 4 // itemsize)                 # 8 (f32) / 16 (bf16) / 32 (i8) rows
    base_to = sub_pack // math.gcd(C, sub_pack)          # smallest TO giving dense sublanes

    tl = _choose_lane_tile(inner)
    lane_steps = inner // tl

    bytes_per_outer_row = tl * itemsize * (C + out_c)    # in + out rows for one folded row
    to_max = max(1, _VMEM_BUDGET_BYTES // (2 * bytes_per_outer_row))
    to_max = max(1, min(to_max, _MAX_BLOCK_ROWS // C if C <= _MAX_BLOCK_ROWS else 1))
    to = _choose_outer_tile(outer, base_to, to_max, lane_steps)

    n_outer_blocks = outer // to
    x_r = x.reshape(n_outer_blocks, to * C, inner)

    kern = functools.partial(_maxmin_kernel, num_units=num_units, group=group,
                             channels=C, outer_tile=to)

    cost = pl.CostEstimate(
        flops=2 * outer * (C - num_units) * inner,        # (group-1) compares per output, x2
        transcendentals=0,
        bytes_accessed=(outer * C * inner + outer * out_c * inner) * itemsize,
    )

    out_r = pl.pallas_call(
        kern,
        out_shape=jax.ShapeDtypeStruct((n_outer_blocks, to * out_c, inner), x.dtype),
        grid_spec=pl.GridSpec(
            grid=(n_outer_blocks, lane_steps),
            in_specs=[pl.BlockSpec((None, to * C, tl), lambda i, j: (i, 0, j))],
            out_specs=pl.BlockSpec((None, to * out_c, tl), lambda i, j: (i, 0, j)),
        ),
        compiler_params=pltpu.CompilerParams(
            dimension_semantics=("parallel", "parallel"),
            vmem_limit_bytes=32 * 1024 * 1024,
        ),
        cost_estimate=cost,
    )(x_r)

    out_shape = list(shape)
    out_shape[ax] = out_c
    return out_r.reshape(out_shape)


# ---------------------------------------------------------------------------
# Pure-JAX reference (mirrors the PyTorch module: view -> max/min -> cat)
# ---------------------------------------------------------------------------

def reference_maxmin(x, num_units, axis=1):
    shape = x.shape
    ax = axis % x.ndim
    C = shape[ax]
    g = C // num_units
    xr = x.reshape(shape[:ax] + (num_units, g) + shape[ax + 1:])
    maxes = jnp.max(xr, axis=ax + 1)
    mins = jnp.min(xr, axis=ax + 1)
    return jnp.concatenate([maxes, mins], axis=ax)


if __name__ == "__main__":
    checks = [
        ((2, 4, 16, 16), 2, jnp.float32),    # primary test shape (B, C, H, W)
        ((4, 8, 16, 16), 2, jnp.float32),    # group=4 -> tree reduce; TO>1 fold
        ((2, 4, 16, 16), 2, jnp.bfloat16),   # packed-dtype path
    ]
    key = jax.random.PRNGKey(0)
    for shape, nu, dt in checks:
        key, sub = jax.random.split(key)
        x = jax.random.normal(sub, shape, dtype=jnp.float32).astype(dt)
        out = jax.block_until_ready(maxmin_forward(x, nu, axis=1))
        ref = reference_maxmin(x, nu, axis=1)
        if out.shape != ref.shape:
            raise SystemExit("shape mismatch: {} vs {}".format(out.shape, ref.shape))
        if not bool(jnp.array_equal(out, ref)):
            err = float(jnp.max(jnp.abs(out.astype(jnp.float32) - ref.astype(jnp.float32))))
            raise SystemExit("mismatch for shape={}: max abs err = {:e}".format(shape, err))
    print("KERNEL_OK")
</pallas_src>

<mosaic_0001>
module attributes {stable_mosaic.version = 11 : i64} {
  func.func @_maxmin_kernel(%arg0: i32, %arg1: i32, %arg2: memref<1x4x256xf32, #tpu.memory_space<vmem>>, %arg3: memref<1x4x256xf32, #tpu.memory_space<vmem>>) attributes {dimension_semantics = [#tpu.dimension_semantics<parallel>, #tpu.dimension_semantics<parallel>], iteration_bounds = array<i64: 2, 1>, scalar_prefetch = 0 : i64, scratch_operands = 0 : i64, tpu.core_type = #tpu.core_type<tc>, window_params = [{transform_indices = @transform_0, window_bounds = array<i64: 1, 4, 256>}, {transform_indices = @transform_1, window_bounds = array<i64: 1, 4, 256>}]} {
    %c0 = arith.constant 0 : index
    %c0_0 = arith.constant 0 : index
    %c0_1 = arith.constant 0 : index
    %0 = vector.load %arg2[%c0, %c0_0, %c0_1] : memref<1x4x256xf32, #tpu.memory_space<vmem>>, vector<1x1x256xf32>
    %1 = vector.shape_cast %0 : vector<1x1x256xf32> to vector<1x256xf32>
    %c0_2 = arith.constant 0 : index
    %c1 = arith.constant 1 : index
    %c0_3 = arith.constant 0 : index
    %2 = vector.load %arg2[%c0_2, %c1, %c0_3] : memref<1x4x256xf32, #tpu.memory_space<vmem>>, vector<1x1x256xf32>
    %3 = vector.shape_cast %2 : vector<1x1x256xf32> to vector<1x256xf32>
    %4 = arith.maximumf %1, %3 : vector<1x256xf32>
    %5 = arith.minimumf %1, %3 : vector<1x256xf32>
    %c0_4 = arith.constant 0 : index
    %c0_5 = arith.constant 0 : index
    %c0_6 = arith.constant 0 : index
    %6 = vector.load %arg3[%c0_4, %c0_5, %c0_6] : memref<1x4x256xf32, #tpu.memory_space<vmem>>, vector<1x1x256xf32>
    %7 = vector.shape_cast %6 : vector<1x1x256xf32> to vector<1x256xf32>
    %8 = vector.shape_cast %4 : vector<1x256xf32> to vector<1x1x256xf32>
    tpu.vector_store %arg3[%c0_4, %c0_5, %c0_6], %8 {strides = array<i32>} : memref<1x4x256xf32, #tpu.memory_space<vmem>>, vector<1x1x256xf32>,
    %c0_7 = arith.constant 0 : index
    %c2 = arith.constant 2 : index
    %c0_8 = arith.constant 0 : index
    %9 = vector.load %arg3[%c0_7, %c2, %c0_8] : memref<1x4x256xf32, #tpu.memory_space<vmem>>, vector<1x1x256xf32>
    %10 = vector.shape_cast %9 : vector<1x1x256xf32> to vector<1x256xf32>
    %11 = vector.shape_cast %5 : vector<1x256xf32> to vector<1x1x256xf32>
    tpu.vector_store %arg3[%c0_7, %c2, %c0_8], %11 {strides = array<i32>} : memref<1x4x256xf32, #tpu.memory_space<vmem>>, vector<1x1x256xf32>,
    %c0_9 = arith.constant 0 : index
    %c2_10 = arith.constant 2 : index
    %c0_11 = arith.constant 0 : index
    %12 = vector.load %arg2[%c0_9, %c2_10, %c0_11] : memref<1x4x256xf32, #tpu.memory_space<vmem>>, vector<1x1x256xf32>
    %13 = vector.shape_cast %12 : vector<1x1x256xf32> to vector<1x256xf32>
    %c0_12 = arith.constant 0 : index
    %c3 = arith.constant 3 : index
    %c0_13 = arith.constant 0 : index
    %14 = vector.load %arg2[%c0_12, %c3, %c0_13] : memref<1x4x256xf32, #tpu.memory_space<vmem>>, vector<1x1x256xf32>
    %15 = vector.shape_cast %14 : vector<1x1x256xf32> to vector<1x256xf32>
    %16 = arith.maximumf %13, %15 : vector<1x256xf32>
    %17 = arith.minimumf %13, %15 : vector<1x256xf32>
    %c0_14 = arith.constant 0 : index
    %c1_15 = arith.constant 1 : index
    %c0_16 = arith.constant 0 : index
    %18 = vector.load %arg3[%c0_14, %c1_15, %c0_16] : memref<1x4x256xf32, #tpu.memory_space<vmem>>, vector<1x1x256xf32>
    %19 = vector.shape_cast %18 : vector<1x1x256xf32> to vector<1x256xf32>
    %20 = vector.shape_cast %16 : vector<1x256xf32> to vector<1x1x256xf32>
    tpu.vector_store %arg3[%c0_14, %c1_15, %c0_16], %20 {strides = array<i32>} : memref<1x4x256xf32, #tpu.memory_space<vmem>>, vector<1x1x256xf32>,
    %c0_17 = arith.constant 0 : index
    %c3_18 = arith.constant 3 : index
    %c0_19 = arith.constant 0 : index
    %21 = vector.load %arg3[%c0_17, %c3_18, %c0_19] : memref<1x4x256xf32, #tpu.memory_space<vmem>>, vector<1x1x256xf32>
    %22 = vector.shape_cast %21 : vector<1x1x256xf32> to vector<1x256xf32>
    %23 = vector.shape_cast %17 : vector<1x256xf32> to vector<1x1x256xf32>
    tpu.vector_store %arg3[%c0_17, %c3_18, %c0_19], %23 {strides = array<i32>} : memref<1x4x256xf32, #tpu.memory_space<vmem>>, vector<1x1x256xf32>,
    return
  }
  func.func @transform_0(%arg0: i32, %arg1: i32) -> (i32, i32, i32) {
    %c0_i32 = arith.constant 0 : i32
    %c0_i32_0 = arith.constant 0 : i32
    return %arg0, %c0_i32, %arg1 : i32, i32, i32
  }
  func.func @transform_1(%arg0: i32, %arg1: i32) -> (i32, i32, i32) {
    %c0_i32 = arith.constant 0 : i32
    %c0_i32_0 = arith.constant 0 : i32
    return %arg0, %c0_i32, %arg1 : i32, i32, i32
  }
}

</mosaic_0001>

<bundles_post_ra>
// kernel: tpu_custom_call.1
= control target key start
LH: loop header
LB: loop body
LE: loop exit
PB: predicated region body
PF: predicated region fallthrough
CT: control target
= control target key end

     0   :  { %6 = vsyncpa [#allocation3], 0  ;;  %s641_s0 = inlined_call_operand.hbm [shape: f32[2,4,256], index: 0, kind: input, shape index: {}]   ;;  %s642_s1 = inlined_call_operand.hbm [shape: f32[2,4,256], index: 1, kind: output, shape index: {}]  }
   0x1   :  { %8 = vsyncpa [#allocation3 + $0x1], 0 }
   0x2   :  { %9 = vsyncpa [#allocation4], 0 }
   0x3   :  { %11 = vsyncpa [#allocation4 + $0x1], 0  ;;  %s483_s6 = smov 0   ;;  %s485_s7 = smov 0  }
   0x4   :  { %s487_s8 = smov 0   ;;  %s489_s9 = smov 0  }
   0x5   :  { %s491_s10 = smov 0   ;;  %s493_s11 = smov 0  }
   0x6 LB: > { %s276_s12 = sadd.s32 4294967295, %s469_s11   ;;  %s277_s13 = sadd.s32 4294967294, %s469_s11   ;;  %s469_s11 = sphi %s493_s11, %s17_s11   ;;  %s465_s10 = sphi %s491_s10, %s656_s10   ;;  %s461_s9 = sphi %s489_s9, %s655_s9   ;;  %s457_s8 = sphi %s487_s8, %s654_s8   ;;  %s453_s7 = sphi %s485_s7, %s653_s7   ;;  %s449_s6 = sphi %s483_s6, %s652_s6  }
   0x7   : > { %s29_s14 = sadd.s32 1, %s465_s10  ;;  %s38_s15 = sadd.s32 1, %s457_s8 }
   0x8   : > { %p31_p0 = scmp.ge.s32.totalorder %s29_s14, 2  ;;  %p45_p1 = scmp.ne.s32.totalorder %s457_s8, %s453_s7 }
   0x9   : > { %p46_p2 = scmp.eq.s32.totalorder %s469_s11, 0  ;;  %p51_p3 = scmp.ne.s32.totalorder %s453_s7, %s449_s6 }
   0xa   : > { %s658_s14 = smov (%p31_p0, %s29_s14), 0  ;;  %p52_p5 = scmp.eq.s32.totalorder %s276_s12, 0 }
   0xb   : > { %p524_p4 = por %p46_p2, %p45_p1  ;;  %s33_s17 = ssub.s32 %s465_s10, %s658_s14 }
   0xc   : > { %p77_p6 = scmp.eq.s32.totalorder %s276_s12, 1  ;;  %p36_p7 = scmp.eq.s32.totalorder %s33_s17, 0 }
   0xd   : > { %p530_p8 = por %p52_p5, %p51_p3  ;;  %p83_p10 = scmp.eq.s32.totalorder %s277_s13, 1 }
   0xe   : > { %p534_p9 = por %p77_p6, %p45_p1  ;;  %p311_p13 = scmp.lt.s32.totalorder %s469_s11, 2 }
   0xf   : > { %s539_s20 = scalar_select %p36_p7, %s457_s8, %s38_s15  }
  0x10   : > { %p541_p11 = por %p83_p10, %p51_p3  ;;  %s103_s22 = sand.u32 1, %s457_s8  }
  0x11   : > { %s280_s23 = sshll.u32 %s103_s22, 3  ;;  %s297_s24 = sshll.u32 %s465_s10, 7 }
  0x12   : > { %s646_s21 = scalar_select %p541_p11, 1, 0 }
  0x13   : > { %s115_s27 = scalar_lea.hbm %s641_s0, %s297_s24  ;;  %s107_s28 = scalar_lea.vmem [#allocation2], %s280_s23 }
  0x14   : > { %s117_s29 = sshll.u32 %s107_s28, 4  ;;  %p554_p0 = pnand %p311_p13, %p524_p4  ;;  %s118_s29 = int_to_ptr.vmem [resolvable:$true] %s117_s29 }
  0x15   : > { %p283_p1 = scmp.ge.s32.totalorder %s469_s11, 1  ;;  %p122_p2 = scmp.lt.s32.totalorder %s469_s11, 3 }
  0x16   : > { %s104_s2 = scalar_lea.sflag [#allocation3], %s103_s22  ;;  %p363_p3 = pneg %p554_p0 }
  0x17   : > { %s374_s3 = scalar_lea.vmem %s118_s29, 128  ;;  %s471_s4 = smov [#allocation2]  }
  0x18   : > { %p375_p5 = scmp.ne.s32.totalorder %s118_s29, %s374_s3  ;;  %s379_s5 = sshll.u32 %s471_s4, 4  ;;  %s380_s5 = int_to_ptr.vmem [resolvable:$false] %s379_s5 }
  0x19   : > { %s381_s12 = scalar_lea.vmem %s380_s5, 256  ;;  %p382_p10 = scmp.lt.s32.totalorder %s118_s29, %s380_s5 }
  0x1a   : > { %p377_p6 = pnand %p375_p5, %p363_p3  ;;  %p383_p12 = scmp.lt.s32.totalorder %s381_s12, %s374_s3 }
  0x1c   : > { %p378_p7 = pneg %p377_p6  ;;  %p384_p4 = por %p383_p12, %p382_p10 }
  0x1e   : > { %p385_p13 = pnand %p384_p4, %p378_p7 }
  0x20   : > { %388 = shalt.err (!%p385_p13)
}
  0x21   : > { %306 = dma.hbm_to_vmem [thread:$0]  (!%p554_p0), %s115_s27, 128, %s118_s29, %s104_s2  }
  0x22   : > { %p123_p11 = pnand %p283_p1, %p122_p2 }
  0x23   : > { %s569_s13 = sand.u32 (!%p123_p11), 1, %s453_s7  }
  0x24   : > { %126 = sbr.rel (%p123_p11) target bundleno = 68 (0x44), region = 24  ;;  %s284_s15 = sshll.u32 (!%p123_p11), %s569_s13, 3 }
  0x25   : > { %s129_s16 = scalar_lea.sflag (!%p123_p11), [#allocation3], %s569_s13  ;;  %s132_s17 = scalar_lea.vmem (!%p123_p11), [#allocation2], %s284_s15 }
  0x29   : > { %440 = dma.done.wait (%p530_p8), %s129_s16, 128  }
  0x2a   : > { %442 = vsyncadd (%p530_p8), %s129_s16, 4294967168  ;;  %v158_v0 = vlaneseq  ;;  %s150_s22 = scalar_lea.vmem [#allocation5], %s284_s15  ;;  %s298_s24 = sshll.u32 %s461_s9, 7  ;;  %v153_v2 = vld [vmem:[%s132_s17] ss:$4 sm:$0x3] }
  0x2b   : > { %s192_s23 = sshll.u32 %s150_s22, 4  ;;  %v286_v3 = vld [vmem:[%s132_s17 + $0x1] ss:$4 sm:$0x3]  ;;  %s587_s26 = scalar_lea.hbm %s642_s1, %s298_s24  ;;  %s582_s23 = int_to_ptr.vmem [resolvable:$true] %s192_s23 }
  0x2c   : > { %vm577_vm0 = vcmp.lt.s32.totalorder %v158_v0, 256  ;;  %v156_v4 = vmax.f32 %v153_v2, %v286_v3  ;;  %v157_v5 = vmin.f32 %v153_v2, %v286_v3  ;;  %v288_v6 = vld [vmem:[%s132_s17 + $0x2] ss:$4 sm:$0x3]  ;;  %s176_s9 = scalar_lea.sflag [#allocation4], %s569_s13  ;;  %s389_s27 = scalar_lea.vmem %s582_s23, 128 }
  0x2d   : > { %v289_v7 = vld [vmem:[%s132_s17 + $0x3] ss:$4 sm:$0x3]  ;;  %p390_p8 = scmp.ne.s32.totalorder %s582_s23, %s389_s27  ;;  %s472_s28 = smov [#allocation5]  }
  0x2e   : > { %v169_v8 = vmax.f32 %v288_v6, %v289_v7  ;;  %v170_v9 = vmin.f32 %v288_v6, %v289_v7  ;;  %162 = vst.msk [vmem:[%s150_s22] ss:$4 sm:$0x3] %vm577_vm0, %v156_v4  ;;  %287 = vst.msk [vmem:[%s150_s22 + $0x2] ss:$4 sm:$0x3] %vm577_vm0, %v157_v5 }
  0x2f   : > { %p391_p11 = pnand %p390_p8, %p534_p9  ;;  %s393_s29 = sshll.u32 %s472_s28, 4  ;;  %s394_s29 = int_to_ptr.vmem [resolvable:$false] %s393_s29 }
  0x30   : > { %290 = vst.msk [vmem:[%s150_s22 + $0x1] ss:$4 sm:$0x3] %vm577_vm0, %v169_v8  ;;  %291 = vst.msk [vmem:[%s150_s22 + $0x3] ss:$4 sm:$0x3] %vm577_vm0, %v170_v9  ;;  %p396_p0 = scmp.lt.s32.totalorder %s582_s23, %s394_s29 }
  0x31   : > { %p392_p12 = pneg %p391_p11  ;;  %s395_s30 = scalar_lea.vmem %s394_s29, 256 }
  0x32   : > { %p397_p1 = scmp.lt.s32.totalorder %s395_s30, %s389_s27 }
  0x34   : > { %p398_p2 = por %p397_p1, %p396_p0 }
  0x36   : > { %p399_p3 = pnand %p398_p2, %p392_p12 }
  0x38   : > { %402 = shalt.err (!%p399_p3)
}
  0x39   : > { %s403_s2 = scalar_lea.hbm %s587_s26, 128  ;;  %s407_s5 = scalar_lea.hbm %s642_s1, 256 }
  0x3a   : > { %p404_p5 = scmp.ne.s32.totalorder %s587_s26, %s403_s2  ;;  %p408_p10 = scmp.lt.s32.totalorder %s587_s26, %s642_s1 }
  0x3b   : > { %p409_p4 = scmp.lt.s32.totalorder %s407_s5, %s403_s2 }
  0x3c   : > { %p405_p6 = pnand %p404_p5, %p534_p9 }
  0x3d   : > { %p410_p13 = por %p409_p4, %p408_p10 }
  0x3e   : > { %p406_p7 = pneg %p405_p6 }
  0x40   : > { %p411_p8 = pnand %p410_p13, %p406_p7 }
  0x42   : > { %414 = shalt.err (!%p411_p8)
}
  0x43   : > { %301 = dma.vmem_to_hbm [thread:$0]  (%p534_p9), %s582_s23, 128, %s587_s26, %s176_s9  }
  0x44 PF: > { %s204_s15 = sand.u32 1, %s449_s6   ;;  %p650_p11 = scmp.ne.s32.totalorder %s646_s21, 0 }
  0x45   : > { %p651_p12 = scmp.ge.s32.totalorder %s469_s11, 2  ;;  %s205_s16 = scalar_lea.sflag [#allocation4], %s204_s15 }
  0x47   : > { %p308_p0 = pnand %p651_p12, %p650_p11 }
  0x49   : > { %p309_p1 = pneg %p308_p0 }
  0x4b   : > { %444 = dma.done.wait (%p309_p1), %s205_s16, 128  }
  0x4c   : > { %446 = vsyncadd (%p309_p1), %s205_s16, 4294967168  ;;  %s17_s11 = sadd.s32 1, %s469_s11   ;;  %s652_s6 = smov %s453_s7 }
  0x4d   : > { %p14_p2 = scmp.ge.s32.totalorder %s17_s11, 4   ;;  %s653_s7 = smov %s457_s8 }
  0x4e   : > { %s654_s8 = smov %s539_s20  ;;  %s655_s9 = smov %s465_s10 }
  0x4f   : > { %s656_s10 = smov %s658_s14  ;;  %16 = sbr.rel (!%p14_p2) target bundleno = 6 (0x6), region = 75 }
  0x54   :  { %210 = vsyncpa [#allocation3], 1 }
  0x55   :  { %212 = vsyncpa [#allocation3 + $0x1], 1 }
  0x56   :  { %213 = vsyncpa [#allocation4], 1 }
  0x57   :  { %215 = vsyncpa [#allocation4 + $0x1], 1 }

</bundles_post_ra>
